<compile_context>
chip_gen: v6e
topology: v6e:2x2x1
jax: 0.10.0
libtpu: 0.0.40
codegen_flags: <defaults>
</compile_context>

<pallas_src>
import functools

import jax
import jax.numpy as jnp
from jax.experimental import pallas as pl
from jax.experimental.pallas import tpu as pltpu


def _rnn_char_kernel(x_ref, w_ih_ref, w_hh_ref, b_ref, w_fc_ref, b_fc_ref,
                     out_ref):
    # x_ref: (T*B, I) time-major flattened input.
    TB, _ = x_ref.shape
    H = w_hh_ref.shape[0]
    B, _ = out_ref.shape
    T = TB // B

    w_ih = w_ih_ref[...]          # (I, H)  == W_ih^T
    w_hh = w_hh_ref[...]          # (H, H)  == W_hh^T
    b = b_ref[...]                # (1, H)  == b_ih + b_hh

    # Single fused input projection for ALL timesteps (+ one bias broadcast):
    # independent of the hidden state, so only h @ W_hh^T is serial below.
    xw_all = (
        jnp.dot(x_ref[...], w_ih, preferred_element_type=jnp.float32) + b
    )                                                   # (T*B, H)

    # Serial recurrence, fully unrolled (T is small and static).  Each step's
    # input projection is a static contiguous row slice of xw_all.
    h = jnp.zeros((B, H), jnp.float32)
    for t in range(T):
        xw_t = xw_all[t * B:(t + 1) * B, :]             # (B, H), contiguous
        h = jnp.tanh(
            jnp.dot(h, w_hh, preferred_element_type=jnp.float32) + xw_t
        )

    # Final linear layer on the last hidden state.
    logits = (
        jnp.dot(h, w_fc_ref[...], preferred_element_type=jnp.float32)
        + b_fc_ref[...]
    )
    out_ref[...] = logits.astype(out_ref.dtype)


def prepare_rnn_char_params(w_ih, w_hh, b_ih, b_hh, w_fc, b_fc):
    """One-time weight prep (call once at init, NOT per forward)."""
    H = w_hh.shape[0]
    O = w_fc.shape[0]
    return {
        "w_ih_t": jnp.transpose(w_ih),                  # (I, H)
        "w_hh_t": jnp.transpose(w_hh),                  # (H, H)
        "b": (b_ih + b_hh).reshape(1, H),               # (1, H)
        "w_fc_t": jnp.transpose(w_fc),                  # (H, O)
        "b_fc": b_fc.reshape(1, O),                     # (1, O)
    }


@jax.jit
def rnn_char_forward(x_btI, params):
    """x_btI: (B, T, I) like PyTorch batch_first. Returns (B, O)."""
    B, T, I = x_btI.shape
    H = params["w_hh_t"].shape[0]
    O = params["w_fc_t"].shape[1]

    # Time-major flatten (single tiny op fused into this jit'd executable);
    # rows of x2d are [t0b0..t0b{B-1}, t1b0.., ...] so step t is rows
    # [t*B, (t+1)*B).
    x2d = jnp.transpose(x_btI, (1, 0, 2)).reshape(T * B, I)

    out = pl.pallas_call(
        _rnn_char_kernel,
        out_shape=jax.ShapeDtypeStruct((B, O), x_btI.dtype),
        grid_spec=pltpu.PrefetchScalarGridSpec(
            num_scalar_prefetch=0,
            grid=(1,),                                        # single invocation
            in_specs=[
                pl.BlockSpec((T * B, I), lambda i: (0, 0)),   # whole X in VMEM
                pl.BlockSpec((I, H), lambda i: (0, 0)),       # W_ih^T
                pl.BlockSpec((H, H), lambda i: (0, 0)),       # W_hh^T
                pl.BlockSpec((1, H), lambda i: (0, 0)),       # bias (b_ih+b_hh)
                pl.BlockSpec((H, O), lambda i: (0, 0)),       # W_fc^T
                pl.BlockSpec((1, O), lambda i: (0, 0)),       # fc bias
            ],
            out_specs=pl.BlockSpec((B, O), lambda i: (0, 0)),
        ),
        compiler_params=pltpu.CompilerParams(
            dimension_semantics=("arbitrary",),
        ),
    )(x2d, params["w_ih_t"], params["w_hh_t"], params["b"],
      params["w_fc_t"], params["b_fc"])
    return out


def _reference(x_btI, w_ih, w_hh, b_ih, b_hh, w_fc, b_fc):
    B, T, I = x_btI.shape
    H = w_hh.shape[0]
    h = jnp.zeros((B, H), jnp.float32)
    for t in range(T):
        h = jnp.tanh(x_btI[:, t, :] @ w_ih.T + b_ih + h @ w_hh.T + b_hh)
    return h @ w_fc.T + b_fc


if __name__ == "__main__":
    # Small shapes consistent with the module's forward:
    # X: (batch, seq, input_size); RNN hidden; FC output.
    B, T, I, H, O = 4, 8, 16, 32, 8

    key = jax.random.PRNGKey(0)
    kx, k1, k2, k3, k4, k5, k6 = jax.random.split(key, 7)

    x = jax.random.normal(kx, (B, T, I), jnp.float32)

    # Deterministic parameter init (uniform, PyTorch-like scale 1/sqrt(H)).
    s = 1.0 / jnp.sqrt(jnp.float32(H))
    w_ih = jax.random.uniform(k1, (H, I), jnp.float32, -s, s)   # weight_ih_l0
    w_hh = jax.random.uniform(k2, (H, H), jnp.float32, -s, s)   # weight_hh_l0
    b_ih = jax.random.uniform(k3, (H,), jnp.float32, -s, s)
    b_hh = jax.random.uniform(k4, (H,), jnp.float32, -s, s)
    w_fc = jax.random.uniform(k5, (O, H), jnp.float32, -s, s)
    b_fc = jax.random.uniform(k6, (O,), jnp.float32, -s, s)

    # One-time prep (outside the per-call hot path).
    params = prepare_rnn_char_params(w_ih, w_hh, b_ih, b_hh, w_fc, b_fc)
    params = jax.tree_util.tree_map(jax.block_until_ready, params)

    out = rnn_char_forward(x, params)
    out = jax.block_until_ready(out)

    ref = _reference(x, w_ih, w_hh, b_ih, b_hh, w_fc, b_fc)
    assert out.shape == (B, O)
    assert jnp.allclose(out, ref, atol=1e-5, rtol=1e-5)

    print("KERNEL_OK")
</pallas_src>

<mosaic_0001>
module attributes {stable_mosaic.version = 11 : i64} {
  func.func @_rnn_char_kernel(%arg0: i32, %arg1: memref<32x16xf32, #tpu.memory_space<vmem>>, %arg2: memref<16x32xf32, #tpu.memory_space<vmem>>, %arg3: memref<32x32xf32, #tpu.memory_space<vmem>>, %arg4: memref<1x32xf32, #tpu.memory_space<vmem>>, %arg5: memref<32x8xf32, #tpu.memory_space<vmem>>, %arg6: memref<1x8xf32, #tpu.memory_space<vmem>>, %arg7: memref<4x8xf32, #tpu.memory_space<vmem>>) attributes {dimension_semantics = [#tpu.dimension_semantics<arbitrary>], iteration_bounds = array<i64: 1>, scalar_prefetch = 0 : i64, scratch_operands = 0 : i64, tpu.core_type = #tpu.core_type<tc>, window_params = [{pipeline_mode = #tpu.pipeline_mode<synchronous>, transform_indices = @transform_0, window_bounds = array<i64: 32, 16>}, {pipeline_mode = #tpu.pipeline_mode<synchronous>, transform_indices = @transform_1, window_bounds = array<i64: 16, 32>}, {pipeline_mode = #tpu.pipeline_mode<synchronous>, transform_indices = @transform_2, window_bounds = array<i64: 32, 32>}, {pipeline_mode = #tpu.pipeline_mode<synchronous>, transform_indices = @transform_3, window_bounds = array<i64: 1, 32>}, {pipeline_mode = #tpu.pipeline_mode<synchronous>, transform_indices = @transform_4, window_bounds = array<i64: 32, 8>}, {pipeline_mode = #tpu.pipeline_mode<synchronous>, transform_indices = @transform_5, window_bounds = array<i64: 1, 8>}, {pipeline_mode = #tpu.pipeline_mode<synchronous>, transform_indices = @transform_6, window_bounds = array<i64: 4, 8>}]} {
    %c0 = arith.constant 0 : index
    %c0_0 = arith.constant 0 : index
    %0 = vector.load %arg2[%c0, %c0_0] : memref<16x32xf32, #tpu.memory_space<vmem>>, vector<16x32xf32>
    %c0_1 = arith.constant 0 : index
    %c0_2 = arith.constant 0 : index
    %1 = vector.load %arg3[%c0_1, %c0_2] : memref<32x32xf32, #tpu.memory_space<vmem>>, vector<32x32xf32>
    %c0_3 = arith.constant 0 : index
    %c0_4 = arith.constant 0 : index
    %2 = vector.load %arg4[%c0_3, %c0_4] : memref<1x32xf32, #tpu.memory_space<vmem>>, vector<1x32xf32>
    %c0_5 = arith.constant 0 : index
    %c0_6 = arith.constant 0 : index
    %3 = vector.load %arg1[%c0_5, %c0_6] : memref<32x16xf32, #tpu.memory_space<vmem>>, vector<32x16xf32>
    %cst = arith.constant dense<0.000000e+00> : vector<32x32xf32>
    %4 = tpu.matmul %3, %0, %cst {dimension_numbers = #tpu.dot_dimension_numbers<[1], [0], [0], [1], [0, 0, 1, 1], [], []>} : vector<32x16xf32>, vector<16x32xf32>, vector<32x32xf32> -> vector<32x32xf32>
    %5 = vector.broadcast %2 : vector<1x32xf32> to vector<32x32xf32>
    %6 = arith.addf %4, %5 : vector<32x32xf32>
    %cst_7 = arith.constant 0.000000e+00 : f32
    %7 = vector.broadcast %cst_7 : f32 to vector<4x32xf32>
    %8 = vector.extract_strided_slice %6 {offsets = [0, 0], sizes = [4, 32], strides = [1, 1]} : vector<32x32xf32> to vector<4x32xf32>
    %cst_8 = arith.constant dense<0.000000e+00> : vector<4x32xf32>
    %9 = tpu.matmul %7, %1, %cst_8 {dimension_numbers = #tpu.dot_dimension_numbers<[1], [0], [0], [1], [0, 0, 1, 1], [], []>} : vector<4x32xf32>, vector<32x32xf32>, vector<4x32xf32> -> vector<4x32xf32>
    %10 = arith.addf %9, %8 : vector<4x32xf32>
    %11 = math.tanh %10 : vector<4x32xf32>
    %12 = vector.extract_strided_slice %6 {offsets = [4, 0], sizes = [4, 32], strides = [1, 1]} : vector<32x32xf32> to vector<4x32xf32>
    %cst_9 = arith.constant dense<0.000000e+00> : vector<4x32xf32>
    %13 = tpu.matmul %11, %1, %cst_9 {dimension_numbers = #tpu.dot_dimension_numbers<[1], [0], [0], [1], [0, 0, 1, 1], [], []>} : vector<4x32xf32>, vector<32x32xf32>, vector<4x32xf32> -> vector<4x32xf32>
    %14 = arith.addf %13, %12 : vector<4x32xf32>
    %15 = math.tanh %14 : vector<4x32xf32>
    %16 = vector.extract_strided_slice %6 {offsets = [8, 0], sizes = [4, 32], strides = [1, 1]} : vector<32x32xf32> to vector<4x32xf32>
    %cst_10 = arith.constant dense<0.000000e+00> : vector<4x32xf32>
    %17 = tpu.matmul %15, %1, %cst_10 {dimension_numbers = #tpu.dot_dimension_numbers<[1], [0], [0], [1], [0, 0, 1, 1], [], []>} : vector<4x32xf32>, vector<32x32xf32>, vector<4x32xf32> -> vector<4x32xf32>
    %18 = arith.addf %17, %16 : vector<4x32xf32>
    %19 = math.tanh %18 : vector<4x32xf32>
    %20 = vector.extract_strided_slice %6 {offsets = [12, 0], sizes = [4, 32], strides = [1, 1]} : vector<32x32xf32> to vector<4x32xf32>
    %cst_11 = arith.constant dense<0.000000e+00> : vector<4x32xf32>
    %21 = tpu.matmul %19, %1, %cst_11 {dimension_numbers = #tpu.dot_dimension_numbers<[1], [0], [0], [1], [0, 0, 1, 1], [], []>} : vector<4x32xf32>, vector<32x32xf32>, vector<4x32xf32> -> vector<4x32xf32>
    %22 = arith.addf %21, %20 : vector<4x32xf32>
    %23 = math.tanh %22 : vector<4x32xf32>
    %24 = vector.extract_strided_slice %6 {offsets = [16, 0], sizes = [4, 32], strides = [1, 1]} : vector<32x32xf32> to vector<4x32xf32>
    %cst_12 = arith.constant dense<0.000000e+00> : vector<4x32xf32>
    %25 = tpu.matmul %23, %1, %cst_12 {dimension_numbers = #tpu.dot_dimension_numbers<[1], [0], [0], [1], [0, 0, 1, 1], [], []>} : vector<4x32xf32>, vector<32x32xf32>, vector<4x32xf32> -> vector<4x32xf32>
    %26 = arith.addf %25, %24 : vector<4x32xf32>
    %27 = math.tanh %26 : vector<4x32xf32>
    %28 = vector.extract_strided_slice %6 {offsets = [20, 0], sizes = [4, 32], strides = [1, 1]} : vector<32x32xf32> to vector<4x32xf32>
    %cst_13 = arith.constant dense<0.000000e+00> : vector<4x32xf32>
    %29 = tpu.matmul %27, %1, %cst_13 {dimension_numbers = #tpu.dot_dimension_numbers<[1], [0], [0], [1], [0, 0, 1, 1], [], []>} : vector<4x32xf32>, vector<32x32xf32>, vector<4x32xf32> -> vector<4x32xf32>
    %30 = arith.addf %29, %28 : vector<4x32xf32>
    %31 = math.tanh %30 : vector<4x32xf32>
    %32 = vector.extract_strided_slice %6 {offsets = [24, 0], sizes = [4, 32], strides = [1, 1]} : vector<32x32xf32> to vector<4x32xf32>
    %cst_14 = arith.constant dense<0.000000e+00> : vector<4x32xf32>
    %33 = tpu.matmul %31, %1, %cst_14 {dimension_numbers = #tpu.dot_dimension_numbers<[1], [0], [0], [1], [0, 0, 1, 1], [], []>} : vector<4x32xf32>, vector<32x32xf32>, vector<4x32xf32> -> vector<4x32xf32>
    %34 = arith.addf %33, %32 : vector<4x32xf32>
    %35 = math.tanh %34 : vector<4x32xf32>
    %36 = vector.extract_strided_slice %6 {offsets = [28, 0], sizes = [4, 32], strides = [1, 1]} : vector<32x32xf32> to vector<4x32xf32>
    %cst_15 = arith.constant dense<0.000000e+00> : vector<4x32xf32>
    %37 = tpu.matmul %35, %1, %cst_15 {dimension_numbers = #tpu.dot_dimension_numbers<[1], [0], [0], [1], [0, 0, 1, 1], [], []>} : vector<4x32xf32>, vector<32x32xf32>, vector<4x32xf32> -> vector<4x32xf32>
    %38 = arith.addf %37, %36 : vector<4x32xf32>
    %39 = math.tanh %38 : vector<4x32xf32>
    %c0_16 = arith.constant 0 : index
    %c0_17 = arith.constant 0 : index
    %40 = vector.load %arg5[%c0_16, %c0_17] : memref<32x8xf32, #tpu.memory_space<vmem>>, vector<32x8xf32>
    %cst_18 = arith.constant dense<0.000000e+00> : vector<4x8xf32>
    %41 = tpu.matmul %39, %40, %cst_18 {dimension_numbers = #tpu.dot_dimension_numbers<[1], [0], [0], [1], [0, 0, 1, 1], [], []>} : vector<4x32xf32>, vector<32x8xf32>, vector<4x8xf32> -> vector<4x8xf32>
    %c0_19 = arith.constant 0 : index
    %c0_20 = arith.constant 0 : index
    %42 = vector.load %arg6[%c0_19, %c0_20] : memref<1x8xf32, #tpu.memory_space<vmem>>, vector<1x8xf32>
    %43 = vector.broadcast %42 : vector<1x8xf32> to vector<4x8xf32>
    %44 = arith.addf %41, %43 : vector<4x8xf32>
    %c0_21 = arith.constant 0 : index
    %c0_22 = arith.constant 0 : index
    %45 = vector.load %arg7[%c0_21, %c0_22] : memref<4x8xf32, #tpu.memory_space<vmem>>, vector<4x8xf32>
    tpu.vector_store %arg7[%c0_21, %c0_22], %44 {strides = array<i32>} : memref<4x8xf32, #tpu.memory_space<vmem>>, vector<4x8xf32>,
    return
  }
  func.func @transform_0(%arg0: i32) -> (i32, i32) {
    %c0_i32 = arith.constant 0 : i32
    %c0_i32_0 = arith.constant 0 : i32
    %c0_i32_1 = arith.constant 0 : i32
    return %c0_i32, %c0_i32_0 : i32, i32
  }
  func.func @transform_1(%arg0: i32) -> (i32, i32) {
    %c0_i32 = arith.constant 0 : i32
    %c0_i32_0 = arith.constant 0 : i32
    %c0_i32_1 = arith.constant 0 : i32
    return %c0_i32, %c0_i32_0 : i32, i32
  }
  func.func @transform_2(%arg0: i32) -> (i32, i32) {
    %c0_i32 = arith.constant 0 : i32
    %c0_i32_0 = arith.constant 0 : i32
    %c0_i32_1 = arith.constant 0 : i32
    return %c0_i32, %c0_i32_0 : i32, i32
  }
  func.func @transform_3(%arg0: i32) -> (i32, i32) {
    %c0_i32 = arith.constant 0 : i32
    %c0_i32_0 = arith.constant 0 : i32
    %c0_i32_1 = arith.constant 0 : i32
    return %c0_i32, %c0_i32_0 : i32, i32
  }
  func.func @transform_4(%arg0: i32) -> (i32, i32) {
    %c0_i32 = arith.constant 0 : i32
    %c0_i32_0 = arith.constant 0 : i32
    %c0_i32_1 = arith.constant 0 : i32
    return %c0_i32, %c0_i32_0 : i32, i32
  }
  func.func @transform_5(%arg0: i32) -> (i32, i32) {
    %c0_i32 = arith.constant 0 : i32
    %c0_i32_0 = arith.constant 0 : i32
    %c0_i32_1 = arith.constant 0 : i32
    return %c0_i32, %c0_i32_0 : i32, i32
  }
  func.func @transform_6(%arg0: i32) -> (i32, i32) {
    %c0_i32 = arith.constant 0 : i32
    %c0_i32_0 = arith.constant 0 : i32
    %c0_i32_1 = arith.constant 0 : i32
    return %c0_i32, %c0_i32_0 : i32, i32
  }
}

</mosaic_0001>

<bundles_post_ra>
// kernel: rnn_char_forward.1
= control target key start
LH: loop header
LB: loop body
LE: loop exit
PB: predicated region body
PF: predicated region fallthrough
CT: control target
= control target key end

     0   :  { %v1059_v3 = vmov 0.0   ;;  %vm41_vm0 = vcmask 130048   ;;  %s1264_s0 = inlined_call_operand.vmem [shape: f32[32,16], index: 0, kind: input, shape index: {}]   ;;  %s1265_s1 = inlined_call_operand.vmem [shape: f32[16,32], index: 1, kind: input, shape index: {}]   ;;  %s1266_s2 = inlined_call_operand.vmem [shape: f32[32,32], index: 2, kind: input, shape index: {}]   ;;  %s1267_s3 = inlined_call_operand.vmem [shape: f32[1,32], index: 3, kind: input, shape index: {}]   ;;  %s1268_s4 = inlined_call_operand.vmem [shape: f32[32,8], index: 4, kind: input, shape index: {}]   ;;  %s1269_s5 = inlined_call_operand.vmem [shape: f32[1,8], index: 5, kind: input, shape index: {}]   ;;  %s1270_s6 = inlined_call_operand.hbm [shape: f32[4,8], index: 6, kind: output, shape index: {}]  }
   0x1   :  { %v25_v0 = vld [vmem:[%s1265_s1 + $0x8] sm:$0xff]  ;;  %v1103_v1 = vld [vmem:[%s1266_s2 + $0x18] sm:$0xff]  ;;  %v24_v2 = vld [vmem:[%s1265_s1] sm:$0xff]  ;;  %919 = vmatprep.subr.mxu1 %v1059_v3 }
   0x2   :  { %909 = vmatprep.subr.mxu0 %v25_v0  ;;  %v31_v4 = vld [vmem:[%s1264_s0] sm:$0xff]  ;;  %920 = vmatpush3.msra.mxu1 %v1103_v1  ;;  %v1116_v5 = vld [vmem:[%s1266_s2 + $0x10] sm:$0xff]  ;;  %v32_v6 = vld [vmem:[%s1264_s0 + $0x8] sm:$0xff] }
   0x3   :  { %910 = vmatpush3.msra.mxu0 %v25_v0 }
   0x4   :  { %11 = vsyncpa [#allocation3], 0  ;;  %911 = vmatprep.subr.mxu0 %v24_v2  ;;  %921 = vmatprep.subr.mxu1 %v1059_v3  ;;  %v1126_v7 = vld [vmem:[%s1266_s2 + $0x8] sm:$0xff]  ;;  %v1134_v8 = vld [vmem:[%s1266_s2] sm:$0xff]  ;;  %vm1060_vm1 = vmmov 0   ;;  %vm139_vm2 = vcmask 261120  }
   0x5   :  { %912 = vmatpush3.msra.mxu0 %v24_v2  ;;  %913 = vmatprep.mubr.msk.f32.mxu0 %vm41_vm0, %v31_v4  ;;  %v33_v9 = vld [vmem:[%s1264_s0 + $0x10] sm:$0xff]  ;;  %v34_v10 = vld [vmem:[%s1264_s0 + $0x18] sm:$0xff]  ;;  %v1175_v12 = vld [vmem:[%s1267_s3] ss:$0 sm:$0xff]  ;;  %s1061_s25 = smov [#allocation2]   ;;  %vm828_vm3 = vcmask 60416  }
   0x6   :  { %922 = vmatpush3.msra.mxu1 %v1116_v5  ;;  %914 = vmatmul.mubr.msk.f32.vlgmr.msra.gmra.mxu0 %vm41_vm0, %v32_v6  ;;  %v747_v51 = vld [vmem:[%s1268_s4 + $0x18] sm:$0xff]  ;;  %v746_v52 = vld [vmem:[%s1268_s4 + $0x10] sm:$0xff]  ;;  %v745_v53 = vld [vmem:[%s1268_s4 + $0x8] sm:$0xff]  ;;  %s836_s26 = sshll.u32 %s1061_s25, 4  ;;  %s837_s26 = int_to_ptr.vmem [resolvable:$true] %s836_s26 }
   0x7   :  { %923 = vmatprep.subr.mxu1 %v1059_v3  ;;  %927 = vmatprep.mubr.msk.f32.mxu1 %vm1060_vm1, %v1059_v3  ;;  %v744_v54 = vld [vmem:[%s1268_s4] sm:$0xff]  ;;  %s1037_s4 = scalar_lea.vmem %s837_s26, 64  ;;  %p1042_p1 = scmp.lt.s32.totalorder %s837_s26, %s837_s26 }
   0x8   :  { %924 = vmatpush3.msra.mxu1 %v1126_v7  ;;  %930 = vmatprep.subr.mxu0 %v1059_v3  ;;  %v856_v60 = vld [vmem:[%s1269_s5] ss:$0 sm:$0xff]  ;;  %p1038_p0 = scmp.ne.s32.totalorder %s837_s26, %s1037_s4  ;;  %p1043_p2 = scmp.lt.s32.totalorder %s1037_s4, %s1037_s4 }
   0x9   :  { %925 = vmatprep.subr.mxu1 %v1059_v3  ;;  %931 = vmatpush3.msra.mxu0 %v1103_v1 }
   0xa   :  { %926 = vmatpush3.msra.mxu1 %v1134_v8  ;;  %932 = vmatprep.subr.mxu0 %v1059_v3  ;;  %p1044_p3 = por %p1043_p2, %p1042_p1 }
   0xb   :  { %928 = vmatmul.mubr.f32.vlgmr.msra.gmra.mxu1 %v1059_v3  ;;  %933 = vmatpush3.msra.mxu0 %v1116_v5 }
   0xc   :  { %934 = vmatprep.subr.mxu0 %v1059_v3  ;;  %941 = vmatprep.subr.mxu1 %v1059_v3  ;;  %p1045_p4 = pnand %p1044_p3, %p1038_p0 }
   0xd   :  { %935 = vmatpush3.msra.mxu0 %v1126_v7  ;;  %942 = vmatpush3.msra.mxu1 %v1103_v1 }
   0xe   :  { %936 = vmatprep.subr.mxu0 %v1059_v3  ;;  %943 = vmatprep.subr.mxu1 %v1059_v3 }
   0xf   :  { %937 = vmatpush3.msra.mxu0 %v1134_v8  ;;  %944 = vmatpush3.msra.mxu1 %v1116_v5 }
  0x10   :  { %945 = vmatprep.subr.mxu1 %v1059_v3  ;;  %949 = vmatprep.mubr.msk.f32.mxu1 %vm1060_vm1, %v1059_v3 }
  0x11   :  { %946 = vmatpush3.msra.mxu1 %v1126_v7  ;;  %952 = vmatprep.subr.mxu0 %v1059_v3 }
  0x12   :  { %947 = vmatprep.subr.mxu1 %v1059_v3  ;;  %916 = vmatprep.mubr.msk.f32.mxu0 %vm41_vm0, %v33_v9 }
  0x13   :  { %948 = vmatpush3.msra.mxu1 %v1134_v8  ;;  %917 = vmatmul.mubr.msk.f32.gmra.mxu0 %vm41_vm0, %v34_v10 }
  0x14   :  { %963 = vmatprep.subr.mxu1 %v1059_v3  ;;  %938 = vmatprep.mubr.msk.f32.mxu0 %vm1060_vm1, %v1059_v3 }
  0xc6   :  { %v915_v11 = vpop.f32.mrf.mxu0 }
  0xc7   :  { %v126_v26 = vadd.f32 %v915_v11, %v1175_v12 }
  0xc8   :  { %v120_v13 = vpop.f32.mrf.mxu0 }
  0xc9   :  { %v121_v14 = vadd.f32 %v1175_v12, %v120_v13  ;;  %v366_v31 = vrot.slane %v126_v26, 4 }
  0xcb   :  { %v209_v15 = vpop.f32.mrf.mxu1  ;;  %v215_v21 = vrot.slane %v121_v14, 4 }
  0xcc   :  { %v210_v16 = vadd.f32 %v209_v15, %v121_v14 }
  0xcd   :  { %v929_v17 = vpop.f32.mrf.mxu1 }
  0xce   :  { %1021 = vtanh.f32 %v210_v16 }
  0xd3   :  { %v1189_v19 = vpop.f32.mrf.mxu0 }
  0xd4   :  { %v136_v46 = vadd.f32 %v1189_v19, %v1175_v12 }
  0xd5   :  { %v130_v20 = vpop.f32.mrf.mxu0 }
  0xd6   :  { %v131_v36 = vadd.f32 %v1175_v12, %v130_v20  ;;  %v668_v55 = vrot.slane %v136_v46, 4 }
  0xd8   :  { %v517_v41 = vrot.slane %v131_v36, 4 }
  0xdb   :  { %v1022_v18 = vpop.eup %1021 }
  0xdc   :  { %939 = vmatmul.mubr.msk.f32.vlgmr.msra.gmra.mxu0 %vm139_vm2, %v1022_v18 }
  0xdd   :  { %953 = vmatpush3.msra.mxu0 %v1103_v1  ;;  %960 = vmatprep.mubr.msk.f32.mxu0 %vm1060_vm1, %v1059_v3 }
  0xde   :  { %954 = vmatprep.subr.mxu0 %v1059_v3 }
  0xdf   :  { %955 = vmatpush3.msra.mxu0 %v1116_v5 }
  0xe0   :  { %956 = vmatprep.subr.mxu0 %v1059_v3 }
  0xe1   :  { %957 = vmatpush3.msra.mxu0 %v1126_v7 }
  0xe2   :  { %958 = vmatprep.subr.mxu0 %v1059_v3 }
  0xe3   :  { %959 = vmatpush3.msra.mxu0 %v1134_v8 }
  0xe4   :  { %974 = vmatprep.subr.mxu0 %v1059_v3 }
 0x19c   :  { %v286_v22 = vpop.f32.mrf.mxu0 }
 0x19d   :  { %v287_v23 = vadd.f32 %v286_v22, %v215_v21 }
 0x19e   :  { %v940_v24 = vpop.f32.mrf.mxu0 }
 0x19f   :  { %1023 = vtanh.f32 %v287_v23 }
 0x1ac   :  { %v1024_v25 = vpop.eup %1023 }
 0x1ad   :  { %950 = vmatmul.mubr.msk.f32.vlgmr.msra.gmra.mxu1 %vm139_vm2, %v1024_v25 }
 0x1ae   :  { %964 = vmatpush3.msra.mxu1 %v1103_v1  ;;  %971 = vmatprep.mubr.msk.f32.mxu1 %vm1060_vm1, %v1059_v3 }
 0x1af   :  { %965 = vmatprep.subr.mxu1 %v1059_v3 }
 0x1b0   :  { %966 = vmatpush3.msra.mxu1 %v1116_v5 }
 0x1b1   :  { %967 = vmatprep.subr.mxu1 %v1059_v3 }
 0x1b2   :  { %968 = vmatpush3.msra.mxu1 %v1126_v7 }
 0x1b3   :  { %969 = vmatprep.subr.mxu1 %v1059_v3 }
 0x1b4   :  { %970 = vmatpush3.msra.mxu1 %v1134_v8 }
 0x1b5   :  { %985 = vmatprep.subr.mxu1 %v1059_v3 }
 0x26d   :  { %v360_v27 = vpop.f32.mrf.mxu1 }
 0x26e   :  { %v361_v28 = vadd.f32 %v360_v27, %v126_v26 }
 0x26f   :  { %v951_v29 = vpop.f32.mrf.mxu1 }
 0x270   :  { %1025 = vtanh.f32 %v361_v28 }
 0x27d   :  { %v1026_v30 = vpop.eup %1025 }
 0x27e   :  { %961 = vmatmul.mubr.msk.f32.vlgmr.msra.gmra.mxu0 %vm139_vm2, %v1026_v30 }
 0x27f   :  { %975 = vmatpush3.msra.mxu0 %v1103_v1  ;;  %982 = vmatprep.mubr.msk.f32.mxu0 %vm1060_vm1, %v1059_v3 }
 0x280   :  { %976 = vmatprep.subr.mxu0 %v1059_v3 }
 0x281   :  { %977 = vmatpush3.msra.mxu0 %v1116_v5 }
 0x282   :  { %978 = vmatprep.subr.mxu0 %v1059_v3 }
 0x283   :  { %979 = vmatpush3.msra.mxu0 %v1126_v7 }
 0x284   :  { %980 = vmatprep.subr.mxu0 %v1059_v3 }
 0x285   :  { %981 = vmatpush3.msra.mxu0 %v1134_v8 }
 0x286   :  { %996 = vmatprep.subr.mxu0 %v1059_v3 }
 0x33e   :  { %v437_v32 = vpop.f32.mrf.mxu0 }
 0x33f   :  { %v438_v33 = vadd.f32 %v437_v32, %v366_v31 }
 0x340   :  { %v962_v34 = vpop.f32.mrf.mxu0 }
 0x341   :  { %1027 = vtanh.f32 %v438_v33 }
 0x34e   :  { %v1028_v35 = vpop.eup %1027 }
 0x34f   :  { %972 = vmatmul.mubr.msk.f32.vlgmr.msra.gmra.mxu1 %vm139_vm2, %v1028_v35 }
 0x350   :  { %986 = vmatpush3.msra.mxu1 %v1103_v1  ;;  %993 = vmatprep.mubr.msk.f32.mxu1 %vm1060_vm1, %v1059_v3 }
 0x351   :  { %987 = vmatprep.subr.mxu1 %v1059_v3 }
 0x352   :  { %988 = vmatpush3.msra.mxu1 %v1116_v5 }
 0x353   :  { %989 = vmatprep.subr.mxu1 %v1059_v3 }
 0x354   :  { %990 = vmatpush3.msra.mxu1 %v1126_v7 }
 0x355   :  { %991 = vmatprep.subr.mxu1 %v1059_v3 }
 0x356   :  { %992 = vmatpush3.msra.mxu1 %v1134_v8 }
 0x357   :  { %1007 = vmatprep.subr.mxu1 %v1059_v3 }
 0x40f   :  { %v511_v37 = vpop.f32.mrf.mxu1 }
 0x410   :  { %v512_v38 = vadd.f32 %v511_v37, %v131_v36 }
 0x411   :  { %v973_v39 = vpop.f32.mrf.mxu1 }
 0x412   :  { %1029 = vtanh.f32 %v512_v38 }
 0x41f   :  { %v1030_v40 = vpop.eup %1029 }
 0x420   :  { %983 = vmatmul.mubr.msk.f32.vlgmr.msra.gmra.mxu0 %vm139_vm2, %v1030_v40 }
 0x421   :  { %997 = vmatpush3.msra.mxu0 %v1103_v1  ;;  %1004 = vmatprep.mubr.msk.f32.mxu0 %vm1060_vm1, %v1059_v3 }
 0x422   :  { %998 = vmatprep.subr.mxu0 %v1059_v3 }
 0x423   :  { %999 = vmatpush3.msra.mxu0 %v1116_v5 }
 0x424   :  { %1000 = vmatprep.subr.mxu0 %v1059_v3 }
 0x425   :  { %1001 = vmatpush3.msra.mxu0 %v1126_v7 }
 0x426   :  { %1002 = vmatprep.subr.mxu0 %v1059_v3 }
 0x427   :  { %1003 = vmatpush3.msra.mxu0 %v1134_v8 }
 0x4e0   :  { %v588_v42 = vpop.f32.mrf.mxu0 }
 0x4e1   :  { %v589_v43 = vadd.f32 %v588_v42, %v517_v41 }
 0x4e2   :  { %v984_v44 = vpop.f32.mrf.mxu0 }
 0x4e3   :  { %1031 = vtanh.f32 %v589_v43 }
 0x4f0   :  { %v1032_v45 = vpop.eup %1031 }
 0x4f1   :  { %994 = vmatmul.mubr.msk.f32.vlgmr.msra.gmra.mxu1 %vm139_vm2, %v1032_v45 }
 0x4f2   :  { %1015 = vmatprep.mubr.msk.f32.mxu1 %vm1060_vm1, %v1059_v3  ;;  %1008 = vmatpush3.msra.mxu1 %v747_v51 }
 0x4f3   :  { %1009 = vmatprep.subr.mxu1 %v1059_v3 }
 0x4f4   :  { %1010 = vmatpush3.msra.mxu1 %v746_v52 }
 0x4f5   :  { %1011 = vmatprep.subr.mxu1 %v1059_v3 }
 0x4f6   :  { %1012 = vmatpush3.msra.mxu1 %v745_v53 }
 0x4f7   :  { %1013 = vmatprep.subr.mxu1 %v1059_v3 }
 0x4f8   :  { %1014 = vmatpush3.msra.mxu1 %v744_v54 }
 0x5b1   :  { %v662_v47 = vpop.f32.mrf.mxu1 }
 0x5b2   :  { %v663_v48 = vadd.f32 %v662_v47, %v136_v46 }
 0x5b3   :  { %v995_v49 = vpop.f32.mrf.mxu1 }
 0x5b4   :  { %1033 = vtanh.f32 %v663_v48 }
 0x5c1   :  { %v1034_v50 = vpop.eup %1033 }
 0x5c2   :  { %1005 = vmatmul.mubr.msk.f32.vlgmr.msra.gmra.mxu0 %vm139_vm2, %v1034_v50 }
 0x682   :  { %v739_v56 = vpop.f32.mrf.mxu0 }
 0x683   :  { %v740_v57 = vadd.f32 %v739_v56, %v668_v55 }
 0x684   :  { %v1006_v58 = vpop.f32.mrf.mxu0 }
 0x685   :  { %1035 = vtanh.f32 %v740_v57 }
 0x692   :  { %v1036_v59 = vpop.eup %1035 }
 0x693   :  { %1016 = vmatmul.mubr.msk.f32.vlgmr.msra.gmra.mxu1 %vm139_vm2, %v1036_v59 }
 0x753   :  { %v824_v61 = vpop.f32.mrf.mxu1 }
 0x754   :  { %v825_v62 = vadd.f32 %v856_v60, %v824_v61 }
 0x755   :  { %v1017_v63 = vpop.f32.mrf.mxu1 }
 0x756   :  { %829 = vst.msk [vmem:[#allocation2] sm:$0xf] %vm828_vm3, %v825_v62 }
 0x757   :  { %1048 = shalt.err (!%p1045_p4)
}
 0x758   :  { %839 = dma.vmem_to_hbm [thread:$0]  %s837_s26, 64, %s1270_s6, [#allocation3]  }
 0x759   :  { %1057 = dma.done.wait [#allocation3], 64  }
 0x75a   :  { %1058 = vsyncadd [#allocation3], 4294967232 }
 0x75b   :  { %843 = vsyncpa [#allocation3], 1 }

</bundles_post_ra>
